<compile_context>
chip_gen: v5e
topology: v5e:2x2
jax: 0.10.0
libtpu: 0.0.40
codegen_flags: <defaults>
</compile_context>

<pallas_src>
import jax
import jax.numpy as jnp
from jax import lax
from jax.experimental import pallas as pl
from jax.experimental.pallas import tpu as pltpu

_LATENT_DIM = 32
_HIGHEST = lax.Precision.HIGHEST
# Contract dim 1 of LHS with dim 1 of RHS  ==  X @ X^T without forming X^T.
_GRAM_DNUMS = (((1,), (1,)), ((), ()))
_VMEM = pltpu.MemorySpace.VMEM
_VMEM_LIMIT = 32 << 20  # safe on v5e/v6e (128 MiB phys) and v7x (64 MiB phys)


def _row_normalize(w):
    # Row L2 normalization (VPU mul/add + EUP rsqrt).  Zero rows (only the
    # wrapper's padding rows in practice) map to zero instead of NaN so the
    # padded region of the output stays finite; real rows are unaffected.
    sq = jnp.sum(w * w, axis=1, keepdims=True)          # (rows, 1)
    inv = jnp.where(sq > 0.0, lax.rsqrt(sq), 0.0)       # (rows, 1)
    return w * inv


def _cov_kernel_single(w_ref, o_ref):
    # Fused normalize + Gram for small n (single VMEM block, no grid).
    x = _row_normalize(w_ref[...])
    o_ref[...] = lax.dot_general(
        x, x, _GRAM_DNUMS, precision=_HIGHEST,
        preferred_element_type=jnp.float32).astype(o_ref.dtype)


def _normalize_kernel(w_ref, x_ref):
    # One-time row-normalization prologue (hoisted out of the Gram loop).
    x_ref[...] = _row_normalize(w_ref[...])


def _gram_kernel(xi_ref, xj_ref, o_ref):
    # xi_ref: (tm_i, d) resident row-block of X ; xj_ref: (tn_j, d) sweep block.
    # o_ref: (tm_i, tn_j) lane-dense output tile.
    o_ref[...] = lax.dot_general(
        xi_ref[...], xj_ref[...], _GRAM_DNUMS, precision=_HIGHEST,
        preferred_element_type=jnp.float32).astype(o_ref.dtype)


def _largest_divisor_leq(m: int, cap: int) -> int:
    best = 1
    for d in range(1, min(m, cap) + 1):
        if m % d == 0:
            best = d
    return best


def covariance_model_forward(embedding_weight: jax.Array,
                             *, out_dtype=jnp.float32,
                             force_tiled: bool = False) -> jax.Array:
    """embedding_weight: (n, latent_dim)  ->  cov: (n, n) in out_dtype."""
    n, d = embedding_weight.shape
    w = embedding_weight.astype(jnp.float32)

    # Pad only to a multiple of 128: lane-dense stores, padding waste < 128
    # rows, and no pad/slice at all when n is already 128-aligned.
    n_pad = int(pl.cdiv(n, 128)) * 128
    if n_pad != n:
        w = jnp.pad(w, ((0, n_pad - n), (0, 0)))

    out_itemsize = jnp.dtype(out_dtype).itemsize
    cost = pl.CostEstimate(
        flops=2 * n_pad * n_pad * d,
        transcendentals=n_pad,
        bytes_accessed=4 * 3 * n_pad * d + out_itemsize * n_pad * n_pad,
    )

    use_tiled = force_tiled or n_pad > 1024
    if not use_tiled:
        # Single VMEM block: at n_pad <= 1024 the f32 output is <= 4 MiB, well
        # inside every chip's scoped VMEM default; the whole op is dispatch /
        # latency bound, so extra grid steps would only hurt.
        cov_pad = pl.pallas_call(
            _cov_kernel_single,
            out_shape=jax.ShapeDtypeStruct((n_pad, n_pad), out_dtype),
            in_specs=[pl.BlockSpec((n_pad, d), lambda: (0, 0),
                                   memory_space=_VMEM)],
            out_specs=pl.BlockSpec((n_pad, n_pad), lambda: (0, 0),
                                   memory_space=_VMEM),
            compiler_params=pltpu.CompilerParams(
                vmem_limit_bytes=_VMEM_LIMIT),
            cost_estimate=cost,
        )(w)
    else:
        # Rectangular tiles from exact divisors of n_pad:
        #   tn_j (lane dim) up to 2048, tm_i (sublane dim) up to 512
        # => max 4 MiB f32 output tile, 8 MiB double-buffered (+ ~0.7 MiB of
        # X blocks), under v5e's 16 MiB scoped default.
        m = n_pad // 128
        tn_j = 128 * _largest_divisor_leq(m, 16)   # wide lane-dense stores
        tm_i = 128 * _largest_divisor_leq(m, 4)

        # 1) Normalize W once (tiny: n_pad * 32 * 4 bytes each way).
        x = pl.pallas_call(
            _normalize_kernel,
            out_shape=jax.ShapeDtypeStruct((n_pad, d), jnp.float32),
            grid=(n_pad // tn_j,),
            in_specs=[pl.BlockSpec((tn_j, d), lambda i: (i, 0),
                                   memory_space=_VMEM)],
            out_specs=pl.BlockSpec((tn_j, d), lambda i: (i, 0),
                                   memory_space=_VMEM),
            compiler_params=pltpu.CompilerParams(
                dimension_semantics=("parallel",),
                vmem_limit_bytes=_VMEM_LIMIT),
        )(w)

        # 2) Pure Gram matmul over (i, j) tiles; i parallel (megacore split),
        #    j arbitrary so each core sweeps j with its X_i block resident.
        grid = (n_pad // tm_i, n_pad // tn_j)
        cov_pad = pl.pallas_call(
            _gram_kernel,
            out_shape=jax.ShapeDtypeStruct((n_pad, n_pad), out_dtype),
            grid=grid,
            in_specs=[
                pl.BlockSpec((tm_i, d), lambda i, j: (i, 0),
                             memory_space=_VMEM),
                pl.BlockSpec((tn_j, d), lambda i, j: (j, 0),
                             memory_space=_VMEM),
            ],
            out_specs=pl.BlockSpec((tm_i, tn_j), lambda i, j: (i, j),
                                   memory_space=_VMEM),
            compiler_params=pltpu.CompilerParams(
                dimension_semantics=("parallel", "arbitrary"),
                vmem_limit_bytes=_VMEM_LIMIT),
            cost_estimate=cost,
        )(x, x)

    if n_pad != n:
        # Only taken for non-128-aligned n; padding rows/cols are zero, so the
        # padded array must not be consumed directly (it is singular).
        cov_pad = cov_pad[:n, :n]
    return cov_pad


def _reference_forward(embedding_weight: jax.Array) -> jax.Array:
    x = embedding_weight / jnp.linalg.norm(embedding_weight, axis=1,
                                           keepdims=True)
    return jnp.dot(x, x.T, precision=_HIGHEST)


if __name__ == "__main__":
    key = jax.random.PRNGKey(0)
    k1, k2, k3 = jax.random.split(key, 3)

    # Primary: module-sized problem (n securities, latent_dim=32).
    # nn.Embedding default init ~ N(0, 1); deterministic synthetic weights.
    n = 64
    w = jax.random.normal(k1, (n, _LATENT_DIM), dtype=jnp.float32)
    cov = jax.block_until_ready(covariance_model_forward(w))
    ref = _reference_forward(w)
    assert cov.shape == (n, n)
    assert jnp.allclose(cov, ref, atol=1e-5, rtol=1e-5), "single-block mismatch"

    # Tiled path with unaligned n: 200 -> padded to 256, norm prologue + 1x1 Gram grid.
    n2 = 200
    w2 = jax.random.normal(k2, (n2, _LATENT_DIM), dtype=jnp.float32)
    cov2 = jax.block_until_ready(
        covariance_model_forward(w2, force_tiled=True))
    ref2 = _reference_forward(w2)
    assert cov2.shape == (n2, n2)
    assert jnp.allclose(cov2, ref2, atol=1e-5, rtol=1e-5), "tiled mismatch (n=200)"

    # Tiled path with a multi-step grid: n=640 -> m=5 -> 128-row x 640-col tiles, grid (5, 1).
    n3 = 640
    w3 = jax.random.normal(k3, (n3, _LATENT_DIM), dtype=jnp.float32)
    cov3 = jax.block_until_ready(
        covariance_model_forward(w3, force_tiled=True))
    ref3 = _reference_forward(w3)
    assert cov3.shape == (n3, n3)
    assert jnp.allclose(cov3, ref3, atol=1e-5, rtol=1e-5), "tiled mismatch (n=640)"

    print("KERNEL_OK")
</pallas_src>

<mosaic_0001>
module attributes {stable_mosaic.version = 11 : i64} {
  func.func @_cov_kernel_single(%arg0: memref<128x32xf32, #tpu.memory_space<vmem>>, %arg1: memref<128x128xf32, #tpu.memory_space<vmem>>) attributes {dimension_semantics = [], scalar_prefetch = 0 : i64, scratch_operands = 0 : i64, tpu.core_type = #tpu.core_type<tc>} {
    %c0 = arith.constant 0 : index
    %c0_0 = arith.constant 0 : index
    %0 = vector.load %arg0[%c0, %c0_0] : memref<128x32xf32, #tpu.memory_space<vmem>>, vector<128x32xf32>
    %1 = arith.mulf %0, %0 : vector<128x32xf32>
    %cst = arith.constant dense<0.000000e+00> : vector<128xf32>
    %2 = vector.multi_reduction <add>, %1, %cst [1] : vector<128x32xf32> to vector<128xf32>
    %3 = vector.shape_cast %2 : vector<128xf32> to vector<128x1xf32>
    %cst_1 = arith.constant 0.000000e+00 : f32
    %4 = vector.broadcast %cst_1 : f32 to vector<128x1xf32>
    %5 = arith.cmpf ogt, %3, %4 : vector<128x1xf32>
    %6 = math.rsqrt %3 : vector<128x1xf32>
    %cst_2 = arith.constant 0.000000e+00 : f32
    %7 = vector.broadcast %cst_2 : f32 to vector<128x1xf32>
    %8 = arith.select %5, %6, %7 : vector<128x1xi1>, vector<128x1xf32>
    %9 = vector.broadcast %8 : vector<128x1xf32> to vector<128x32xf32>
    %10 = arith.mulf %0, %9 : vector<128x32xf32>
    %cst_3 = arith.constant dense<0.000000e+00> : vector<128x128xf32>
    %11 = tpu.matmul %10, %10, %cst_3 {dimension_numbers = #tpu.dot_dimension_numbers<[1], [1], [0], [0], [0, 0, 1, 0], [], []>, precision = #tpu.contract_precision<fp32>} : vector<128x32xf32>, vector<128x32xf32>, vector<128x128xf32> -> vector<128x128xf32>
    %c0_4 = arith.constant 0 : index
    %c0_5 = arith.constant 0 : index
    %12 = vector.load %arg1[%c0_4, %c0_5] : memref<128x128xf32, #tpu.memory_space<vmem>>, vector<128x128xf32>
    tpu.vector_store %arg1[%c0_4, %c0_5], %11 {strides = array<i32>} : memref<128x128xf32, #tpu.memory_space<vmem>>, vector<128x128xf32>,
    return
  }
}

</mosaic_0001>

<bundles_post_ra>
// kernel: tpu_custom_call.1
= control target key start
LH: loop header
LB: loop body
LE: loop exit
PB: predicated region body
PF: predicated region fallthrough
CT: control target
= control target key end

     0   :  { %vm41_vm0 = vcmask 261120   ;;  %s2268_s0 = inlined_call_operand.vmem [shape: f32[128,32], index: 0, kind: input, shape index: {}]   ;;  %s2269_s1 = inlined_call_operand.hbm [shape: f32[128,128], index: 1, kind: output, shape index: {}]  }
   0x1   :  { %v1295_v0 = vld [vmem:[%s2268_s0 + $0x78] sm:$0xff]  ;;  %v1300_v1 = vld [vmem:[%s2268_s0 + $0x68] sm:$0xff]  ;;  %v1316_v6 = vld [vmem:[%s2268_s0 + $0x70] sm:$0xff] }
   0x2   :  { %v1305_v2 = vld [vmem:[%s2268_s0 + $0x58] sm:$0xff]  ;;  %v40_v3 = vmul.f32 %v1295_v0, %v1295_v0  ;;  %v38_v4 = vmul.f32 %v1300_v1, %v1300_v1  ;;  %v1321_v7 = vld [vmem:[%s2268_s0 + $0x60] sm:$0xff]  ;;  %v1329_v11 = vld [vmem:[%s2268_s0 + $0x50] sm:$0xff]  ;;  %v39_v12 = vmul.f32 %v1316_v6, %v1316_v6 }
   0x3   :  { %v36_v5 = vmul.f32 %v1305_v2, %v1305_v2  ;;  %v37_v13 = vmul.f32 %v1321_v7, %v1321_v7 }
   0x4   :  { %v87_v8 = vsel %vm41_vm0, %v40_v3, 0.0  ;;  %v81_v9 = vsel %vm41_vm0, %v38_v4, 0.0 }
   0x5   :  { %v75_v10 = vsel %vm41_vm0, %v36_v5, 0.0  ;;  %88 = vadd.xlane.f32.xlu0 %v87_v8  ;;  %82 = vadd.xlane.f32.xlu1 %v81_v9 }
   0x6   :  { %76 = vadd.xlane.f32.xlu2 %v75_v10 }
   0x7   :  { %6 = vsyncpa [#allocation3], 0  ;;  %v35_v14 = vmul.f32 %v1329_v11, %v1329_v11  ;;  %v84_v15 = vsel %vm41_vm0, %v39_v12, 0.0  ;;  %v78_v16 = vsel %vm41_vm0, %v37_v13, 0.0  ;;  %v1343_v18 = vld [vmem:[%s2268_s0 + $0x48] sm:$0xff]  ;;  %v1348_v19 = vld [vmem:[%s2268_s0 + $0x40] sm:$0xff] }
   0x8   :  { %v1353_v20 = vld [vmem:[%s2268_s0 + $0x38] sm:$0xff]  ;;  %v34_v21 = vmul.f32 %v1343_v18, %v1343_v18  ;;  %v33_v22 = vmul.f32 %v1348_v19, %v1348_v19  ;;  %v1367_v27 = vld [vmem:[%s2268_s0 + $0x30] sm:$0xff]  ;;  %v1372_v28 = vld [vmem:[%s2268_s0 + $0x28] sm:$0xff]  ;;  %s1174_s12 = sshll.u32 %s2269_s1, 4  ;;  %s1280_s13 = smov 128   ;;  %s1175_s12 = int_to_ptr.hbm [resolvable:$true] %s1174_s12 }
   0x9   :  { %v72_v17 = vsel %vm41_vm0, %v35_v14, 0.0  ;;  %v32_v23 = vmul.f32 %v1353_v20, %v1353_v20  ;;  %v1377_v29 = vld [vmem:[%s2268_s0 + $0x20] sm:$0xff]  ;;  %v31_v30 = vmul.f32 %v1367_v27, %v1367_v27  ;;  %v30_v31 = vmul.f32 %v1372_v28, %v1372_v28  ;;  %v1391_v36 = vld [vmem:[%s2268_s0 + $0x18] sm:$0xff]  ;;  %v1396_v37 = vld [vmem:[%s2268_s0 + $0x10] sm:$0xff]  ;;  %s1281_s14 = smov 8  }
   0xa   :  { %v69_v24 = vsel %vm41_vm0, %v34_v21, 0.0  ;;  %v66_v25 = vsel %vm41_vm0, %v33_v22, 0.0  ;;  %v29_v32 = vmul.f32 %v1377_v29, %v1377_v29  ;;  %v1401_v38 = vld [vmem:[%s2268_s0 + $0x8] sm:$0xff]  ;;  %v28_v39 = vmul.f32 %v1391_v36, %v1391_v36  ;;  %v1415_v45 = vld [vmem:[%s2268_s0] sm:$0xff]  ;;  %s1279_s0 = smov [#allocation2]  }
   0xb   :  { %v63_v26 = vsel %vm41_vm0, %v32_v23, 0.0  ;;  %v60_v33 = vsel %vm41_vm0, %v31_v30, 0.0  ;;  %v57_v34 = vsel %vm41_vm0, %v30_v31, 0.0  ;;  %v27_v40 = vmul.f32 %v1396_v37, %v1396_v37  ;;  %s1172_s9 = sshll.u32 %s1279_s0, 4  ;;  %s1173_s9 = int_to_ptr.vmem [resolvable:$true] %s1172_s9 }
   0xc   :  { %v54_v35 = vsel %vm41_vm0, %v29_v32, 0.0  ;;  %v26_v41 = vmul.f32 %v1401_v38, %v1401_v38  ;;  %v51_v42 = vsel %vm41_vm0, %v28_v39, 0.0  ;;  %v25_v46 = vmul.f32 %v1415_v45, %v1415_v45 }
   0xd   :  { %85 = vadd.xlane.f32.xlu0 %v84_v15  ;;  %79 = vadd.xlane.f32.xlu1 %v78_v16  ;;  %v48_v43 = vsel %vm41_vm0, %v27_v40, 0.0 }
   0xe   :  { %73 = vadd.xlane.f32.xlu2 %v72_v17  ;;  %v45_v44 = vsel %vm41_vm0, %v26_v41, 0.0  ;;  %v42_v47 = vsel %vm41_vm0, %v25_v46, 0.0 }
  0x15   :  { %70 = vadd.xlane.f32.xlu0 %v69_v24  ;;  %67 = vadd.xlane.f32.xlu1 %v66_v25 }
  0x16   :  { %64 = vadd.xlane.f32.xlu2 %v63_v26 }
  0x1d   :  { %61 = vadd.xlane.f32.xlu0 %v60_v33  ;;  %58 = vadd.xlane.f32.xlu1 %v57_v34 }
  0x1e   :  { %55 = vadd.xlane.f32.xlu2 %v54_v35 }
  0x25   :  { %52 = vadd.xlane.f32.xlu0 %v51_v42  ;;  %49 = vadd.xlane.f32.xlu1 %v48_v43 }
  0x26   :  { %46 = vadd.xlane.f32.xlu2 %v45_v44 }
  0x2d   :  { %43 = vadd.xlane.f32.xlu0 %v42_v47 }
  0x78   :  { %v89_v48 = vpop.xlane.xlu0 %88  ;;  %v1420_v49 = vpop.xlane.xlu1 %82 }
  0x79   :  { %1221 = vrsqrt.f32 %v89_v48  ;;  %v1422_v50 = vpop.xlane.xlu2 %76  ;;  %vm105_vm2 = vcmp.gt.f32.partialorder %v89_v48, 0.0  ;;  %vm262_vm3 = vweird.f32 %v89_v48  ;;  %vm242_vm7 = vweird.f32 %v1420_v49 }
  0x7a   :  { %1223 = vrsqrt.f32 %v1420_v49  ;;  %vm222_vm4 = vweird.f32 %v1422_v50  ;;  %vm103_vm10 = vcmp.gt.f32.partialorder %v1420_v49, 0.0  ;;  %vm101_vm11 = vcmp.gt.f32.partialorder %v1422_v50, 0.0 }
  0x7b   :  { %1225 = vrsqrt.f32 %v1422_v50 }
  0x7f   :  { %v1222_v51 = vpop.eup %1221 }
  0x80   :  { %v1426_v52 = vpop.eup %1223  ;;  %v257_v53 = vmul.f32 %v1222_v51, %v89_v48  ;;  %v1428_v54 = vpop.xlane.xlu0 %85  ;;  %vm263_vm1 = vweird.f32 %v1222_v51 }
  0x81   :  { %v1430_v55 = vpop.xlane.xlu1 %79  ;;  %v1432_v56 = vpop.eup %1225  ;;  %v237_v57 = vmul.f32 %v1426_v52, %v1420_v49  ;;  %1227 = vrsqrt.f32 %v1428_v54  ;;  %vm264_vm6 = vmor %vm262_vm3, %vm263_vm1  ;;  %vm243_vm8 = vweird.f32 %v1426_v52  ;;  %vm252_vm1 = vweird.f32 %v1428_v54 }
  0x82   :  { %v1437_v58 = vpop.xlane.xlu2 %73  ;;  %v258_v59 = vmul.f32 %v1222_v51, %v257_v53  ;;  %v217_v60 = vmul.f32 %v1432_v56, %v1422_v50  ;;  %1229 = vrsqrt.f32 %v1430_v55  ;;  %vm223_vm5 = vweird.f32 %v1432_v56  ;;  %vm1477_vm12 = vmor %vm242_vm7, %vm243_vm8 }
  0x83   :  { %v238_v61 = vmul.f32 %v1426_v52, %v237_v57  ;;  %1231 = vrsqrt.f32 %v1437_v58  ;;  %vm1466_vm9 = vmor %vm222_vm4, %vm223_vm5  ;;  %vm212_vm14 = vweird.f32 %v1437_v58  ;;  %vm104_vm5 = vcmp.gt.f32.partialorder %v1428_v54, 0.0 }
  0x84   :  { %v259_v62 = vmul.f32 0.5, %v258_v59  ;;  %v218_v63 = vmul.f32 %v1432_v56, %v217_v60  ;;  %vm100_vm7 = vcmp.gt.f32.partialorder %v1437_v58, 0.0 }
  0x85   :  { %v239_v3 = vmul.f32 0.5, %v238_v61 }
  0x86   :  { %v260_v4 = vsub.f32 1.5, %v259_v62  ;;  %v219_v5 = vmul.f32 0.5, %v218_v63 }
  0x87   :  { %v1228_v8 = vpop.eup %1227  ;;  %v240_v9 = vsub.f32 1.5, %v239_v3 }
  0x88   :  { %v261_v10 = vmul.f32 %v1222_v51, %v260_v4  ;;  %v220_v12 = vsub.f32 1.5, %v219_v5  ;;  %v247_v13 = vmul.f32 %v1228_v8, %v1428_v54  ;;  %v1448_v14 = vpop.xlane.xlu0 %70  ;;  %v1450_v15 = vpop.eup %1229  ;;  %vm253_vm13 = vweird.f32 %v1228_v8 }
  0x89   :  { %v241_v16 = vmul.f32 %v1426_v52, %v240_v9  ;;  %1233 = vrsqrt.f32 %v1448_v14  ;;  %v1456_v17 = vpop.eup %1231  ;;  %v227_v24 = vmul.f32 %v1450_v15, %v1430_v55  ;;  %v1493_v42 = vpop.xlane.xlu1 %67  ;;  %vm254_vm3 = vmor %vm252_vm1, %vm253_vm13  ;;  %vm233_vm4 = vweird.f32 %v1450_v15 }
  0x8a   :  { %v265_v21 = vsel %vm264_vm6, %v1222_v51, %v261_v10  ;;  %v221_v22 = vmul.f32 %v1432_v56, %v220_v12  ;;  %v248_v23 = vmul.f32 %v1228_v8, %v247_v13  ;;  %v207_v30 = vmul.f32 %v1456_v17, %v1437_v58  ;;  %v1523_v61 = vpop.xlane.xlu2 %64 }
  0x8b   :  { %v281_v25 = vsel %vm105_vm2, %v265_v21, 0.0  ;;  %v228_v34 = vmul.f32 %v1450_v15, %v227_v24  ;;  %v245_v39 = vsel %vm1477_vm12, %v1426_v52, %v241_v16  ;;  %vm213_vm15 = vweird.f32 %v1456_v17 }
  0x8c   :  { %v297_v31 = vmul.f32 %v281_v25, %v1295_v0  ;;  %v249_v32 = vmul.f32 0.5, %v248_v23  ;;  %v208_v35 = vmul.f32 %v1456_v17, %v207_v30  ;;  %v225_v40 = vsel %vm1466_vm9, %v1432_v56, %v221_v22  ;;  %vm1518_vm6 = vmor %vm212_vm14, %vm213_vm15 }
  0x8d   :  { %v229_v46 = vmul.f32 0.5, %v228_v34  ;;  %vm232_vm2 = vweird.f32 %v1430_v55  ;;  %v279_v52 = vsel %vm103_vm10, %v245_v39, 0.0  ;;  %v277_v57 = vsel %vm101_vm11, %v225_v40, 0.0 }
  0x8e   :  { %v1485_v0 = vsel %vm41_vm0, %v297_v31, 0  ;;  %v250_v41 = vsub.f32 1.5, %v249_v32  ;;  %v209_v47 = vmul.f32 0.5, %v208_v35  ;;  %v295_v3 = vmul.f32 %v279_v52, %v1300_v1  ;;  %vm234_vm8 = vmor %vm232_vm2, %vm233_vm4 }
  0x8f   :  { %v1495_v43 = vpop.eup %1233  ;;  %v1498_v44 = vand.u32 4294901760, %v1485_v0  ;;  %v230_v53 = vsub.f32 1.5, %v229_v46  ;;  %1235 = vrsqrt.f32 %v1493_v42  ;;  %vm102_vm9 = vcmp.gt.f32.partialorder %v1430_v55, 0.0 }
  0x90   :  { %v251_v48 = vmul.f32 %v1228_v8, %v250_v41  ;;  %v197_v51 = vmul.f32 %v1495_v43, %v1448_v14  ;;  %v210_v56 = vsub.f32 1.5, %v209_v47  ;;  %v1528_v54 = vpop.xlane.xlu0 %61  ;;  %vm202_vm10 = vweird.f32 %v1448_v14 }
  0x91   :  { %347 = vmatpush.xpose.msra.mxu0 %v1498_v44  ;;  %1186 = vmatpush.xpose.msra.mxu2 %v1498_v44  ;;  %v231_v63 = vmul.f32 %v1450_v15, %v230_v53  ;;  %vm203_vm11 = vweird.f32 %v1495_v43  ;;  %1237 = vrsqrt.f32 %v1523_v61  ;;  %v1555_v55 = vsel %vm41_vm0, %v295_v3, 0 }
  0x92   :  { %v255_v59 = vsel %vm254_vm3, %v1228_v8, %v251_v48  ;;  %v198_v60 = vmul.f32 %v1495_v43, %v197_v51  ;;  %v211_v50 = vmul.f32 %v1456_v17, %v210_v56  ;;  %v293_v8 = vmul.f32 %v277_v57, %v1305_v2  ;;  %vm1572_vm12 = vmor %vm202_vm10, %vm203_vm11  ;;  %v1576_v23 = vpop.xlane.xlu2 %55 }
  0x93   :  { %v280_v62 = vsel %vm104_vm5, %v255_v59, 0.0  ;;  %v235_v9 = vsel %vm234_vm8, %v1450_v15, %v231_v63  ;;  %1239 = vrsqrt.f32 %v1528_v54  ;;  %v1579_v24 = vand.u32 4294901760, %v1555_v55 }
  0x94   :  { %v296_v4 = vmul.f32 %v280_v62, %v1316_v6  ;;  %v199_v5 = vmul.f32 0.5, %v198_v60  ;;  %v215_v1 = vsel %vm1518_vm6, %v1456_v17, %v211_v50  ;;  %v278_v10 = vsel %vm102_vm9, %v235_v9, 0.0  ;;  %v1560_v17 = vpop.xlane.xlu1 %58 }
  0x95   :  { %v276_v2 = vsel %vm100_vm7, %v215_v1, 0.0  ;;  %v294_v15 = vmul.f32 %v278_v10, %v1321_v7  ;;  %v1563_v21 = vsel %vm41_vm0, %v293_v8, 0  ;;  %v1567_v58 = vpop.eup %1235  ;;  %1241 = vrsqrt.f32 %v1560_v17 }
  0x96   :  { %v1544_v6 = vsel %vm41_vm0, %v296_v4, 0  ;;  %v200_v12 = vsub.f32 1.5, %v199_v5  ;;  %v292_v22 = vmul.f32 %v276_v2, %v1329_v11  ;;  %v187_v26 = vmul.f32 %v1567_v58, %v1493_v42 }
  0x97   :  { %v1548_v13 = vand.u32 4294901760, %v1544_v6  ;;  %v1589_v11 = vsub.f32 %v1485_v0, %v1498_v44  ;;  %v1592_v30 = vand.u32 4294901760, %v1563_v21  ;;  %v1595_v31 = vsel %vm41_vm0, %v294_v15, 0  ;;  %v1598_v32 = vpop.eup %1237 }
  0x98   :  { %v201_v16 = vmul.f32 %v1495_v43, %v200_v12  ;;  %vm99_vm13 = vcmp.gt.f32.partialorder %v1448_v14, 0.0  ;;  %vm98_vm14 = vcmp.gt.f32.partialorder %v1493_v42, 0.0  ;;  %v188_v33 = vmul.f32 %v1567_v58, %v187_v26  ;;  %v1604_v34 = vpop.xlane.xlu0 %52 }
  0x99   :  { %349 = vmatpush.xpose.msra.mxu0 %v1548_v13  ;;  %1187 = vmatpush.xpose.msra.mxu2 %v1548_v13  ;;  %vm192_vm15 = vweird.f32 %v1493_v42  ;;  %1243 = vrsqrt.f32 %v1576_v23  ;;  %v1608_v35 = vpop.eup %1239  ;;  %v1611_v14 = vsel %vm41_vm0, %v292_v22, 0  ;;  %vm97_vm1 = vcmp.gt.f32.partialorder %v1523_v61, 0.0 }
  0x9a   :  { %v205_v25 = vsel %vm1572_vm12, %v1495_v43, %v201_v16  ;;  %v177_v39 = vmul.f32 %v1598_v32, %v1523_v61  ;;  %vm182_vm2 = vweird.f32 %v1523_v61  ;;  %v1618_v40 = vand.u32 4294901760, %v1595_v31  ;;  %v1674_v2 = vpop.xlane.xlu2 %46 }
  0x9b   :  { %v275_v0 = vsel %vm99_vm13, %v205_v25, 0.0  ;;  %v189_v41 = vmul.f32 0.5, %v188_v33  ;;  %vm193_vm3 = vweird.f32 %v1567_v58  ;;  %v167_v43 = vmul.f32 %v1608_v35, %v1528_v54  ;;  %v1631_v51 = vpop.eup %1241 }
  0x9c   :  { %v178_v46 = vmul.f32 %v1598_v32, %v177_v39  ;;  %vm172_vm4 = vweird.f32 %v1528_v54  ;;  %1245 = vrsqrt.f32 %v1604_v34  ;;  %v1627_v47 = vand.u32 4294901760, %v1589_v11  ;;  %v1629_v48 = vpop.xlane.xlu1 %49  ;;  %vm1642_vm5 = vmor %vm192_vm15, %vm193_vm3 }
  0x9d   :  { %351 = vmatpush.xpose.msra.mxu0 %v1579_v24  ;;  %1188 = vmatpush.xpose.msra.mxu2 %v1579_v24  ;;  %v1634_v52 = vand.u32 4294901760, %v1611_v14  ;;  %v291_v53 = vmul.f32 %v275_v0, %v1343_v18  ;;  %v190_v56 = vsub.f32 1.5, %v189_v41  ;;  %v168_v57 = vmul.f32 %v1608_v35, %v167_v43 }
  0x9e   :  { %2280 = vst [vmem:[#allocation5_spill] sm:$0xff] %v1627_v47  ;;  %v179_v49 = vmul.f32 0.5, %v178_v46  ;;  %vm183_vm6 = vweird.f32 %v1598_v32  ;;  %v157_v60 = vmul.f32 %v1631_v51, %v1560_v17  ;;  %v501_v18 = vsub.f32 %v1589_v11, %v1627_v47 }
  0x9f   :  { %v1651_v62 = vpop.eup %1243  ;;  %v191_v63 = vmul.f32 %v1567_v58, %v190_v56  ;;  %v169_v50 = vmul.f32 0.5, %v168_v57  ;;  %vm162_vm7 = vweird.f32 %v1560_v17  ;;  %1247 = vrsqrt.f32 %v1629_v48  ;;  %vm1668_vm9 = vmor %vm182_vm2, %vm183_vm6 }
  0xa0   :  { %v180_v3 = vsub.f32 1.5, %v179_v49  ;;  %vm173_vm8 = vweird.f32 %v1608_v35  ;;  %v158_v4 = vmul.f32 %v1631_v51, %v157_v60  ;;  %v147_v5 = vmul.f32 %v1651_v62, %v1576_v23 }
  0xa1   :  { %353 = vmatpush.xpose.msra.mxu0 %v1618_v40  ;;  %1189 = vmatpush.xpose.msra.mxu2 %v1618_v40  ;;  %v1661_v8 = vsel %vm41_vm0, %v291_v53, 0  ;;  %v195_v9 = vsel %vm1642_vm5, %v1567_v58, %v191_v63  ;;  %v170_v10 = vsub.f32 1.5, %v169_v50  ;;  %v1672_v12 = vand.u32 4294901760, %v501_v18  ;;  %vm1690_vm10 = vmor %vm172_vm4, %vm173_vm8 }
  0xa2   :  { %v1678_v15 = vpop.eup %1245  ;;  %v274_v16 = vsel %vm98_vm14, %v195_v9, 0.0  ;;  %v181_v58 = vmul.f32 %v1598_v32, %v180_v3  ;;  %v159_v22 = vmul.f32 0.5, %v158_v4  ;;  %v148_v7 = vmul.f32 %v1651_v62, %v147_v5 }
  0xa3   :  { %v290_v25 = vmul.f32 %v274_v16, %v1348_v19  ;;  %v171_v26 = vmul.f32 %v1608_v35, %v170_v10  ;;  %vm163_vm11 = vweird.f32 %v1631_v51  ;;  %v137_v42 = vmul.f32 %v1678_v15, %v1604_v34  ;;  %512 = vmatpush.xpose.msra.mxu1 %v1672_v12  ;;  %1202 = vmatpush.xpose.msra.mxu3 %v1672_v12 }
  0xa4   :  { %v185_v19 = vsel %vm1668_vm9, %v1598_v32, %v181_v58  ;;  %v160_v0 = vsub.f32 1.5, %v159_v22  ;;  %v149_v39 = vmul.f32 0.5, %v148_v7  ;;  %1249 = vrsqrt.f32 %v1674_v2  ;;  %vm1722_vm13 = vmor %vm162_vm7, %vm163_vm11 }
  0xa5   :  { %355 = vmatpush.xpose.msra.mxu0 %v1592_v30  ;;  %1190 = vmatpush.xpose.msra.mxu2 %v1592_v30  ;;  %v1703_v41 = vpop.eup %1247  ;;  %v273_v43 = vsel %vm97_vm1, %v185_v19, 0.0  ;;  %v138_v46 = vmul.f32 %v1678_v15, %v137_v42  ;;  %vm96_vm12 = vcmp.gt.f32.partialorder %v1528_v54, 0.0  ;;  %v175_v32 = vsel %vm1690_vm10, %v1608_v35, %v171_v26 }
  0xa6   :  { %v161_v53 = vmul.f32 %v1631_v51, %v160_v0  ;;  %v1716_v56 = vand.u32 4294901760, %v1661_v8  ;;  %v150_v57 = vsub.f32 1.5, %v149_v39  ;;  %v127_v54 = vmul.f32 %v1703_v41, %v1629_v48 }
  0xa7   :  { %v139_v59 = vmul.f32 0.5, %v138_v46  ;;  %v1729_v35 = vsel %vm41_vm0, %v290_v25, 0  ;;  %v289_v49 = vmul.f32 %v273_v43, %v1353_v20  ;;  %vm152_vm14 = vweird.f32 %v1576_v23 }
  0xa8   :  { %vm153_vm15 = vweird.f32 %v1651_v62  ;;  %v1736_v60 = vsub.f32 %v1544_v6, %v1548_v13  ;;  %v272_v18 = vsel %vm96_vm12, %v175_v32, 0.0  ;;  %vm95_vm1 = vcmp.gt.f32.partialorder %v1560_v17, 0.0  ;;  %v1790_v17 = vpop.xlane.xlu0 %43 }
  0xa9   :  { %357 = vmatpush.xpose.msra.mxu0 %v1634_v52  ;;  %1191 = vmatpush.xpose.msra.mxu2 %v1634_v52  ;;  %v165_v20 = vsel %vm1722_vm13, %v1631_v51, %v161_v53  ;;  %v151_v50 = vmul.f32 %v1651_v62, %v150_v57  ;;  %v140_v3 = vsub.f32 1.5, %v139_v59  ;;  %v128_v4 = vmul.f32 %v1703_v41, %v127_v54  ;;  %vm1761_vm2 = vmor %vm152_vm14, %vm153_vm15 }
  0xaa   :  { %v1741_v63 = vpop.eup %1249  ;;  %v1750_v6 = vsub.f32 %v1555_v55, %v1579_v24  ;;  %v1754_v5 = vsub.f32 %v1563_v21, %v1592_v30  ;;  %v1757_v9 = vand.u32 4294901760, %v1729_v35  ;;  %v1768_v10 = vsel %vm41_vm0, %v289_v49, 0 }
  0xab   :  { %v117_v1 = vmul.f32 %v1741_v63, %v1674_v2  ;;  %v288_v55 = vmul.f32 %v272_v18, %v1367_v27  ;;  %vm142_vm3 = vweird.f32 %v1604_v34  ;;  %vm143_vm4 = vweird.f32 %v1678_v15 }
  0xac   :  { %v1775_v21 = vsub.f32 %v1595_v31, %v1618_v40  ;;  %v271_v16 = vsel %vm95_vm1, %v165_v20, 0.0  ;;  %v129_v58 = vmul.f32 0.5, %v128_v4  ;;  %vm94_vm5 = vcmp.gt.f32.partialorder %v1576_v23, 0.0  ;;  %vm1795_vm6 = vmor %vm142_vm3, %vm143_vm4 }
  0xad   :  { %359 = vmatpush.xpose.msra.mxu0 %v1716_v56  ;;  %1192 = vmatpush.xpose.msra.mxu2 %v1716_v56  ;;  %v118_v22 = vmul.f32 %v1741_v63, %v117_v1  ;;  %v155_v27 = vsel %vm1761_vm2, %v1651_v62, %v151_v50  ;;  %v141_v7 = vmul.f32 %v1678_v15, %v140_v3  ;;  %v1788_v31 = vand.u32 4294901760, %v1736_v60 }
  0xae   :  { %v1793_v25 = vand.u32 4294901760, %v1768_v10  ;;  %v130_v33 = vsub.f32 1.5, %v129_v58  ;;  %vm132_vm7 = vweird.f32 %v1629_v48  ;;  %vm133_vm8 = vweird.f32 %v1703_v41 }
  0xaf   :  { %2291 = vst [vmem:[#allocation6_spill] sm:$0xff] %v1788_v31  ;;  %v1802_v23 = vsel %vm41_vm0, %v288_v55, 0  ;;  %v287_v62 = vmul.f32 %v271_v16, %v1372_v28  ;;  %v119_v42 = vmul.f32 0.5, %v118_v22  ;;  %v493_v19 = vsub.f32 %v1736_v60, %v1788_v31  ;;  %vm1818_vm10 = vmor %vm132_vm7, %vm133_vm8 }
  0xb0   :  { %v270_v0 = vsel %vm94_vm5, %v155_v27, 0.0  ;;  %v131_v39 = vmul.f32 %v1703_v41, %v130_v33  ;;  %1251 = vrsqrt.f32 %v1790_v17  ;;  %v1810_v43 = vand.u32 4294901760, %v1750_v6 }
  0xb1   :  { %361 = vmatpush.xpose.msra.mxu0 %v1757_v9  ;;  %1193 = vmatpush.xpose.msra.mxu2 %v1757_v9  ;;  %vm93_vm9 = vcmp.gt.f32.partialorder %v1604_v34, 0.0  ;;  %v145_v28 = vsel %vm1795_vm6, %v1678_v15, %v141_v7  ;;  %v120_v32 = vsub.f32 1.5, %v119_v42  ;;  %v1822_v53 = vand.u32 4294901760, %v493_v19 }
  0xb2   :  { %v1825_v61 = vand.u32 4294901760, %v1802_v23  ;;  %v485_v57 = vsub.f32 %v1750_v6, %v1810_v43  ;;  %v1830_v59 = vand.u32 4294901760, %v1775_v21  ;;  %v1833_v34 = vsel %vm41_vm0, %v287_v62, 0 }
  0xb3   :  { %v286_v15 = vmul.f32 %v270_v0, %v1377_v29  ;;  %vm122_vm11 = vweird.f32 %v1674_v2  ;;  %vm123_vm12 = vweird.f32 %v1741_v63  ;;  %518 = vmatpush.xpose.msra.mxu1 %v1822_v53  ;;  %1203 = vmatpush.xpose.msra.mxu3 %v1822_v53  ;;  %v1842_v54 = vsub.f32 %v1611_v14, %v1634_v52 }
  0xb4   :  { %v269_v49 = vsel %vm93_vm9, %v145_v28, 0.0  ;;  %vm92_vm13 = vcmp.gt.f32.partialorder %v1629_v48, 0.0  ;;  %v135_v18 = vsel %vm1818_vm10, %v1703_v41, %v131_v39  ;;  %v121_v29 = vmul.f32 %v1741_v63, %v120_v32  ;;  %vm1865_vm14 = vmor %vm122_vm11, %vm123_vm12 }
  0xb5   :  { %363 = vmatpush.xpose.msra.mxu0 %v1793_v25  ;;  %1194 = vmatpush.xpose.msra.mxu2 %v1793_v25  ;;  %v1851_v20 = vand.u32 4294901760, %v485_v57  ;;  %v477_v50 = vsub.f32 %v1775_v21, %v1830_v59  ;;  %v1856_v14 = vand.u32 4294901760, %v1754_v5  ;;  %v1859_v4 = vand.u32 4294901760, %v1833_v34 }
  0xb6   :  { %v1252_v3 = vpop.eup %1251  ;;  %v1870_v51 = vsel %vm41_vm0, %v286_v15, 0  ;;  %v285_v1 = vmul.f32 %v269_v49, %v1391_v36  ;;  %v1878_v16 = vsub.f32 %v1661_v8, %v1716_v56  ;;  %v268_v58 = vsel %vm92_vm13, %v135_v18, 0.0 }
  0xb7   :  { %v107_v55 = vmul.f32 %v1252_v3, %v1790_v17  ;;  %524 = vmatpush.xpose.msra.mxu1 %v1851_v20  ;;  %1204 = vmatpush.xpose.msra.mxu3 %v1851_v20  ;;  %vm91_vm15 = vcmp.gt.f32.partialorder %v1674_v2, 0.0  ;;  %v1884_v22 = vand.u32 4294901760, %v1842_v54  ;;  %v125_v36 = vsel %vm1865_vm14, %v1741_v63, %v121_v29 }
  0xb8   :  { %v1891_v7 = vand.u32 4294901760, %v477_v50  ;;  %v469_v48 = vsub.f32 %v1754_v5, %v1856_v14  ;;  %v1896_v8 = vand.u32 4294901760, %v1870_v51  ;;  %vm112_vm1 = vweird.f32 %v1790_v17 }
  0xb9   :  { %365 = vmatpush.xpose.msra.mxu0 %v1825_v61  ;;  %1195 = vmatpush.xpose.msra.mxu2 %v1825_v61  ;;  %v108_v27 = vmul.f32 %v1252_v3, %v107_v55  ;;  %v1900_v26 = vsel %vm41_vm0, %v285_v1, 0  ;;  %v284_v33 = vmul.f32 %v268_v58, %v1396_v37  ;;  %vm113_vm2 = vweird.f32 %v1252_v3 }
  0xba   :  { %v1907_v63 = vsub.f32 %v1729_v35, %v1757_v9  ;;  %v267_v42 = vsel %vm91_vm15, %v125_v36, 0.0  ;;  %v1913_v0 = vand.u32 4294901760, %v469_v48  ;;  %v461_v37 = vsub.f32 %v1842_v54, %v1884_v22  ;;  %vm1925_vm3 = vmor %vm112_vm1, %vm113_vm2 }
  0xbb   :  { %v109_v62 = vmul.f32 0.5, %v108_v27  ;;  %530 = vmatpush.xpose.msra.mxu1 %v1891_v7  ;;  %1205 = vmatpush.xpose.msra.mxu3 %v1891_v7  ;;  %v1918_v39 = vand.u32 4294901760, %v1878_v16  ;;  %v1921_v28 = vand.u32 4294901760, %v1900_v26  ;;  %v305_v35 = vsel %vm41_vm0, %v284_v33, 0 }
  0xbc   :  { %v283_v46 = vmul.f32 %v267_v42, %v1401_v38  ;;  %vm90_vm4 = vcmp.gt.f32.partialorder %v1790_v17, 0.0  ;;  %v1936_v57 = vsub.f32 %v1768_v10, %v1793_v25  ;;  %v1942_v49 = vand.u32 4294901760, %v461_v37 }
  0xbd   :  { %367 = vmatpush.xpose.msra.mxu0 %v1859_v4  ;;  %1196 = vmatpush.xpose.msra.mxu2 %v1859_v4  ;;  %v110_v19 = vsub.f32 1.5, %v109_v62  ;;  %v453_v38 = vsub.f32 %v1878_v16, %v1918_v39  ;;  %v1947_v17 = vand.u32 4294901760, %v1907_v63  ;;  %v1949_v18 = vand.u32 4294901760, %v305_v35 }
  0xbe   :  { %v302_v10 = vsel %vm41_vm0, %v283_v46, 0  ;;  %v1978_v27 = vsub.f32 %v1833_v34, %v1859_v4  ;;  %v1997_v37 = vsub.f32 %v1870_v51, %v1896_v8  ;;  %v2015_v51 = vsub.f32 %v1900_v26, %v1921_v28 }
  0xbf   :  { %v111_v32 = vmul.f32 %v1252_v3, %v110_v19  ;;  %536 = vmatpush.xpose.msra.mxu1 %v1913_v0  ;;  %1206 = vmatpush.xpose.msra.mxu3 %v1913_v0  ;;  %v454_v1 = vand.u32 4294901760, %v453_v38  ;;  %v445_v55 = vsub.f32 %v1907_v63, %v1947_v17  ;;  %v1967_v58 = vand.u32 4294901760, %v302_v10 }
  0xc1   :  { %369 = vmatpush.xpose.msra.mxu0 %v1896_v8  ;;  %1197 = vmatpush.xpose.msra.mxu2 %v1896_v8  ;;  %v115_v15 = vsel %vm1925_vm3, %v1252_v3, %v111_v32  ;;  %v1957_v3 = vsub.f32 %v1802_v23, %v1825_v61  ;;  %v446_v48 = vand.u32 4294901760, %v445_v55  ;;  %v1986_v42 = vsub.f32 %v302_v10, %v1967_v58 }
  0xc2   :  { %v266_v29 = vsel %vm90_vm4, %v115_v15, 0.0  ;;  %v2004_v32 = vand.u32 4294901760, %v1978_v27 }
  0xc3   :  { %v282_v50 = vmul.f32 %v266_v29, %v1415_v45  ;;  %542 = vmatpush.xpose.msra.mxu1 %v1942_v49  ;;  %1207 = vmatpush.xpose.msra.mxu3 %v1942_v49  ;;  %v1965_v45 = vand.u32 4294901760, %v1936_v57  ;;  %v1983_v62 = vand.u32 4294901760, %v1957_v3  ;;  %v2009_v38 = vand.u32 4294901760, %v1986_v42 }
  0xc4   :  { %v421_v10 = vsub.f32 %v1978_v27, %v2004_v32 }
  0xc5   :  { %371 = vmatpush.xpose.msra.mxu0 %v1921_v28  ;;  %1198 = vmatpush.xpose.msra.mxu2 %v1921_v28  ;;  %v299_v41 = vsel %vm41_vm0, %v282_v50, 0  ;;  %v437_v33 = vsub.f32 %v1936_v57, %v1965_v45  ;;  %v429_v46 = vsub.f32 %v1957_v3, %v1983_v62  ;;  %v2022_v50 = vand.u32 4294901760, %v1997_v37 }
  0xc6   :  { %v1969_v36 = vand.u32 4294901760, %v299_v41  ;;  %v389_v55 = vsub.f32 %v1986_v42, %v2009_v38  ;;  %v422_v26 = vand.u32 4294901760, %v421_v10 }
  0xc7   :  { %548 = vmatpush.xpose.msra.mxu1 %v454_v1  ;;  %1208 = vmatpush.xpose.msra.mxu3 %v454_v1  ;;  %v1999_v2 = vand.u32 4294901760, %v437_v33  ;;  %v2017_v29 = vand.u32 4294901760, %v429_v46  ;;  %v2036_v33 = vand.u32 4294901760, %v2015_v51 }
  0xc8   :  { %v1972_v23 = vsub.f32 %v299_v41, %v1969_v36  ;;  %v2027_v41 = vsub.f32 %v305_v35, %v1949_v18 }
  0xc9   :  { %373 = vmatpush.xpose.msra.mxu0 %v1949_v18  ;;  %1199 = vmatpush.xpose.msra.mxu2 %v1949_v18  ;;  %v405_v10 = vsub.f32 %v2015_v51, %v2036_v33 }
  0xca   :  { %v1989_v19 = vand.u32 4294901760, %v1972_v23  ;;  %v2041_v35 = vand.u32 4294901760, %v2027_v41 }
  0xcb   :  { %554 = vmatpush.xpose.msra.mxu1 %v446_v48  ;;  %1209 = vmatpush.xpose.msra.mxu3 %v446_v48 }
  0xcc   :  { %v381_v34 = vsub.f32 %v1972_v23, %v1989_v19 }
  0xcd   :  { %375 = vmatpush.xpose.msra.mxu0 %v1967_v58  ;;  %1200 = vmatpush.xpose.msra.mxu2 %v1967_v58 }
  0xce   :  { %v382_v15 = vand.u32 4294901760, %v381_v34  ;;  %v390_v34 = vand.u32 4294901760, %v389_v55 }
  0xcf   :  { %560 = vmatpush.xpose.msra.mxu1 %v1999_v2  ;;  %1210 = vmatpush.xpose.msra.mxu3 %v1999_v2 }
  0xd1   :  { %377 = vmatpush.xpose.msra.mxu0 %v1969_v36  ;;  %1201 = vmatpush.xpose.msra.mxu2 %v1969_v36 }
  0xd3   :  { %566 = vmatpush.xpose.msra.mxu1 %v2017_v29  ;;  %1211 = vmatpush.xpose.msra.mxu3 %v2017_v29 }
  0xd4   :  { %383 = vmatmul.f32.vlgmr.msra.gmra.mxu0 %v382_v15  ;;  %447 = vmatmul.f32.vlgmr.msra.gmra.mxu2 %v446_v48  ;;  %v413_v48 = vsub.f32 %v1997_v37, %v2022_v50 }
  0xd5   :  { %670 = vmatpush.xpose.msrb.mxu2 %v1589_v11  ;;  %929 = vmatpush.xpose.msrb.mxu0 %v1627_v47  ;;  %v397_v47 = vsub.f32 %v2027_v41, %v2041_v35 }
  0xd6   :  { %v414_v46 = vand.u32 4294901760, %v413_v48 }
  0xd7   :  { %572 = vmatpush.xpose.msra.mxu1 %v422_v26  ;;  %1212 = vmatpush.xpose.msra.mxu3 %v422_v26  ;;  %v398_v55 = vand.u32 4294901760, %v397_v47 }
  0xd9   :  { %673 = vmatpush.xpose.msrb.mxu2 %v1736_v60  ;;  %933 = vmatpush.xpose.msrb.mxu0 %v1788_v31  ;;  %v406_v31 = vand.u32 4294901760, %v405_v10 }
  0xdb   :  { %578 = vmatpush.xpose.msra.mxu1 %v414_v46  ;;  %1213 = vmatpush.xpose.msra.mxu3 %v414_v46 }
  0xdc   :  { %391 = vmatmul.f32.gmra.mxu0 %v390_v34  ;;  %455 = vmatmul.f32.gmra.mxu2 %v454_v1 }
  0xdd   :  { %676 = vmatpush.xpose.msrb.mxu2 %v1750_v6  ;;  %937 = vmatpush.xpose.msrb.mxu0 %v1810_v43 }
  0xdf   :  { %584 = vmatpush.xpose.msra.mxu1 %v406_v31  ;;  %1214 = vmatpush.xpose.msra.mxu3 %v406_v31 }
  0xe1   :  { %679 = vmatpush.xpose.msrb.mxu2 %v1775_v21  ;;  %941 = vmatpush.xpose.msrb.mxu0 %v1830_v59 }
  0xe3   :  { %590 = vmatpush.xpose.msra.mxu1 %v398_v55  ;;  %1215 = vmatpush.xpose.msra.mxu3 %v398_v55 }
  0xe4   :  { %399 = vmatmul.f32.gmra.mxu0 %v398_v55  ;;  %463 = vmatmul.f32.gmra.mxu2 %v1942_v49 }
  0xe5   :  { %682 = vmatpush.xpose.msrb.mxu2 %v1754_v5  ;;  %945 = vmatpush.xpose.msrb.mxu0 %v1856_v14 }
  0xe7   :  { %596 = vmatpush.xpose.msra.mxu1 %v390_v34  ;;  %1216 = vmatpush.xpose.msra.mxu3 %v390_v34 }
  0xe9   :  { %685 = vmatpush.xpose.msrb.mxu2 %v1842_v54  ;;  %949 = vmatpush.xpose.msrb.mxu0 %v1884_v22 }
  0xeb   :  { %602 = vmatpush.xpose.msra.mxu1 %v382_v15  ;;  %1217 = vmatpush.xpose.msra.mxu3 %v382_v15 }
  0xec   :  { %407 = vmatmul.f32.gmra.mxu0 %v406_v31  ;;  %471 = vmatmul.f32.gmra.mxu2 %v1913_v0 }
  0xed   :  { %688 = vmatpush.xpose.msrb.mxu2 %v1878_v16  ;;  %953 = vmatpush.xpose.msrb.mxu0 %v1918_v39 }
  0xee   :  { %604 = vmatmul.f32.vlgmr.msra.gmra.mxu1 %v1969_v36  ;;  %636 = vmatmul.f32.vlgmr.msra.gmra.mxu3 %v1757_v9 }
  0xef   :  { %798 = vmatpush.xpose.msrb.mxu3 %v1498_v44  ;;  %1056 = vmatpush.xpose.msrb.mxu1 %v1498_v44 }
  0xf1   :  { %691 = vmatpush.xpose.msrb.mxu2 %v1907_v63  ;;  %957 = vmatpush.xpose.msrb.mxu0 %v1947_v17 }
  0xf3   :  { %800 = vmatpush.xpose.msrb.mxu3 %v1548_v13  ;;  %1058 = vmatpush.xpose.msrb.mxu1 %v1548_v13 }
  0xf4   :  { %415 = vmatmul.f32.gmra.mxu0 %v414_v46  ;;  %479 = vmatmul.f32.gmra.mxu2 %v1891_v7 }
  0xf5   :  { %694 = vmatpush.xpose.msrb.mxu2 %v1936_v57  ;;  %961 = vmatpush.xpose.msrb.mxu0 %v1965_v45 }
  0xf6   :  { %608 = vmatmul.f32.gmra.mxu1 %v1967_v58  ;;  %640 = vmatmul.f32.gmra.mxu3 %v1716_v56 }
  0xf7   :  { %802 = vmatpush.xpose.msrb.mxu3 %v1579_v24  ;;  %1060 = vmatpush.xpose.msrb.mxu1 %v1579_v24 }
  0xf9   :  { %697 = vmatpush.xpose.msrb.mxu2 %v1957_v3  ;;  %965 = vmatpush.xpose.msrb.mxu0 %v1983_v62 }
  0xfb   :  { %804 = vmatpush.xpose.msrb.mxu3 %v1618_v40  ;;  %1062 = vmatpush.xpose.msrb.mxu1 %v1618_v40 }
  0xfc   :  { %423 = vmatmul.f32.gmra.mxu0 %v422_v26  ;;  %487 = vmatmul.f32.gmra.mxu2 %v1851_v20 }
  0xfd   :  { %700 = vmatpush.xpose.msrb.mxu2 %v1978_v27  ;;  %969 = vmatpush.xpose.msrb.mxu0 %v2004_v32 }
  0xfe   :  { %612 = vmatmul.f32.gmra.mxu1 %v1949_v18  ;;  %644 = vmatmul.f32.gmra.mxu3 %v1634_v52 }
  0xff   :  { %806 = vmatpush.xpose.msrb.mxu3 %v1592_v30  ;;  %1064 = vmatpush.xpose.msrb.mxu1 %v1592_v30 }
 0x101   :  { %703 = vmatpush.xpose.msrb.mxu2 %v1997_v37  ;;  %973 = vmatpush.xpose.msrb.mxu0 %v2022_v50 }
 0x103   :  { %808 = vmatpush.xpose.msrb.mxu3 %v1634_v52  ;;  %1066 = vmatpush.xpose.msrb.mxu1 %v1634_v52 }
 0x104   :  { %431 = vmatmul.f32.gmra.mxu0 %v2017_v29  ;;  %495 = vmatmul.f32.gmra.mxu2 %v1822_v53 }
 0x105   :  { %706 = vmatpush.xpose.msrb.mxu2 %v2015_v51  ;;  %977 = vmatpush.xpose.msrb.mxu0 %v2036_v33 }
 0x106   :  { %616 = vmatmul.f32.gmra.mxu1 %v1921_v28  ;;  %648 = vmatmul.f32.gmra.mxu3 %v1592_v30 }
 0x107   :  { %810 = vmatpush.xpose.msrb.mxu3 %v1716_v56  ;;  %1068 = vmatpush.xpose.msrb.mxu1 %v1716_v56 }
 0x109   :  { %709 = vmatpush.xpose.msrb.mxu2 %v2027_v41  ;;  %981 = vmatpush.xpose.msrb.mxu0 %v2041_v35 }
 0x10b   :  { %812 = vmatpush.xpose.msrb.mxu3 %v1757_v9  ;;  %1070 = vmatpush.xpose.msrb.mxu1 %v1757_v9 }
 0x10c   :  { %439 = vmatmul.f32.gmra.mxu0 %v1999_v2  ;;  %503 = vmatmul.f32.gmra.mxu2 %v1672_v12 }
 0x10d   :  { %712 = vmatpush.xpose.msrb.mxu2 %v1986_v42  ;;  %985 = vmatpush.xpose.msrb.mxu0 %v2009_v38 }
 0x10e   :  { %620 = vmatmul.f32.gmra.mxu1 %v1896_v8  ;;  %652 = vmatmul.f32.gmra.mxu3 %v1618_v40 }
 0x10f   :  { %814 = vmatpush.xpose.msrb.mxu3 %v1793_v25  ;;  %1072 = vmatpush.xpose.msrb.mxu1 %v1793_v25 }
 0x111   :  { %715 = vmatpush.xpose.msrb.mxu2 %v1972_v23  ;;  %989 = vmatpush.xpose.msrb.mxu0 %v1989_v19 }
 0x113   :  { %816 = vmatpush.xpose.msrb.mxu3 %v1825_v61  ;;  %1074 = vmatpush.xpose.msrb.mxu1 %v1825_v61 }
 0x114   :  { %718 = vmatmul.f32.vlgmr.msrb.gmra.mxu2 %v1972_v23  ;;  %991 = vmatmul.f32.vlgmr.msrb.gmra.mxu0 %v1969_v36 }
 0x116   :  { %624 = vmatmul.f32.gmra.mxu1 %v1859_v4  ;;  %656 = vmatmul.f32.gmra.mxu3 %v1579_v24 }
 0x117   :  { %818 = vmatpush.xpose.msrb.mxu3 %v1859_v4  ;;  %1076 = vmatpush.xpose.msrb.mxu1 %v1859_v4 }
 0x11b   :  { %820 = vmatpush.xpose.msrb.mxu3 %v1896_v8  ;;  %1078 = vmatpush.xpose.msrb.mxu1 %v1896_v8 }
 0x11c   :  { %723 = vmatmul.f32.gmra.mxu2 %v1986_v42  ;;  %995 = vmatmul.f32.gmra.mxu0 %v1967_v58 }
 0x11e   :  { %628 = vmatmul.f32.gmra.mxu1 %v1825_v61  ;;  %660 = vmatmul.f32.gmra.mxu3 %v1548_v13 }
 0x11f   :  { %822 = vmatpush.xpose.msrb.mxu3 %v1921_v28  ;;  %1080 = vmatpush.xpose.msrb.mxu1 %v1921_v28 }
 0x123   :  { %824 = vmatpush.xpose.msrb.mxu3 %v1949_v18  ;;  %1082 = vmatpush.xpose.msrb.mxu1 %v1949_v18 }
 0x124   :  { %728 = vmatmul.f32.gmra.mxu2 %v2027_v41  ;;  %999 = vmatmul.f32.gmra.mxu0 %v1949_v18 }
 0x126   :  { %632 = vmatmul.f32.gmra.mxu1 %v1793_v25  ;;  %664 = vmatmul.f32.gmra.mxu3 %v1498_v44 }
 0x127   :  { %826 = vmatpush.xpose.msrb.mxu3 %v1967_v58  ;;  %1084 = vmatpush.xpose.msrb.mxu1 %v1967_v58 }
 0x12b   :  { %828 = vmatpush.xpose.msrb.mxu3 %v1969_v36  ;;  %1086 = vmatpush.xpose.msrb.mxu1 %v1969_v36 }
 0x12c   :  { %733 = vmatmul.f32.gmra.mxu2 %v2015_v51  ;;  %1003 = vmatmul.f32.gmra.mxu0 %v1921_v28 }
 0x12e   :  { %832 = vmatmul.f32.vlgmr.msrb.gmra.mxu3 %v1989_v19  ;;  %1088 = vmatmul.f32.vlgmr.msrb.gmra.mxu1 %v1969_v36 }
 0x134   :  { %738 = vmatmul.f32.gmra.mxu2 %v1997_v37  ;;  %1007 = vmatmul.f32.gmra.mxu0 %v1896_v8 }
 0x136   :  { %838 = vmatmul.f32.gmra.mxu3 %v2009_v38  ;;  %1092 = vmatmul.f32.gmra.mxu1 %v1967_v58 }
 0x13c   :  { %743 = vmatmul.f32.gmra.mxu2 %v1978_v27  ;;  %1011 = vmatmul.f32.gmra.mxu0 %v1859_v4 }
 0x13e   :  { %844 = vmatmul.f32.gmra.mxu3 %v2041_v35  ;;  %1096 = vmatmul.f32.gmra.mxu1 %v1949_v18 }
 0x144   :  { %748 = vmatmul.f32.gmra.mxu2 %v1957_v3  ;;  %1015 = vmatmul.f32.gmra.mxu0 %v1825_v61 }
 0x146   :  { %850 = vmatmul.f32.gmra.mxu3 %v2036_v33  ;;  %1100 = vmatmul.f32.gmra.mxu1 %v1921_v28 }
 0x14c   :  { %753 = vmatmul.f32.gmra.mxu2 %v1936_v57  ;;  %1019 = vmatmul.f32.gmra.mxu0 %v1793_v25 }
 0x14e   :  { %856 = vmatmul.f32.gmra.mxu3 %v2022_v50  ;;  %1104 = vmatmul.f32.gmra.mxu1 %v1896_v8 }
 0x151   :  { %v2153_v47 = vpop.f32.mrf.mxu0 }
 0x154   :  { %758 = vmatmul.f32.gmra.mxu2 %v1907_v63  ;;  %1023 = vmatmul.f32.gmra.mxu0 %v1757_v9 }
 0x156   :  { %862 = vmatmul.f32.gmra.mxu3 %v2004_v32  ;;  %1108 = vmatmul.f32.gmra.mxu1 %v1859_v4 }
 0x157   :  { %v448_v12 = vpop.f32.mrf.mxu2 }
 0x159   :  { %v2159_v31 = vpop.f32.mrf.mxu0 }
 0x15c   :  { %763 = vmatmul.f32.gmra.mxu2 %v1878_v16  ;;  %1027 = vmatmul.f32.gmra.mxu0 %v1716_v56 }
 0x15e   :  { %868 = vmatmul.f32.gmra.mxu3 %v1983_v62  ;;  %1112 = vmatmul.f32.gmra.mxu1 %v1825_v61 }
 0x15f   :  { %v456_v53 = vpop.f32.mrf.mxu2 }
 0x161   :  { %v2165_v20 = vpop.f32.mrf.mxu0 }
 0x164   :  { %768 = vmatmul.f32.gmra.mxu2 %v1842_v54  ;;  %1031 = vmatmul.f32.gmra.mxu0 %v1634_v52 }
 0x166   :  { %874 = vmatmul.f32.gmra.mxu3 %v1965_v45  ;;  %1116 = vmatmul.f32.gmra.mxu1 %v1793_v25 }
 0x167   :  { %v464_v7 = vpop.f32.mrf.mxu2 }
 0x169   :  { %v2171_v8 = vpop.f32.mrf.mxu0 }
 0x16b   :  { %v2177_v4 = vpop.f32.mrf.mxu1 }
 0x16c   :  { %773 = vmatmul.f32.gmra.mxu2 %v1754_v5  ;;  %1035 = vmatmul.f32.gmra.mxu0 %v1592_v30 }
 0x16e   :  { %880 = vmatmul.f32.gmra.mxu3 %v1947_v17  ;;  %1120 = vmatmul.f32.gmra.mxu1 %v1757_v9 }
 0x16f   :  { %v472_v16 = vpop.f32.mrf.mxu2 }
 0x171   :  { %v2181_v61 = vpop.f32.mrf.mxu0  ;;  %v637_v54 = vpop.f32.mrf.mxu3 }
 0x172   :  { %v2185_v63 = vadd.f32 %v637_v54, %v448_v12 }
 0x173   :  { %v2187_v25 = vpop.f32.mrf.mxu1 }
 0x174   :  { %778 = vmatmul.f32.gmra.mxu2 %v1775_v21  ;;  %1039 = vmatmul.f32.gmra.mxu0 %v1618_v40  ;;  %v610_v33 = vadd.f32 %v2187_v25, %v2159_v31 }
 0x176   :  { %886 = vmatmul.f32.gmra.mxu3 %v1918_v39  ;;  %1124 = vmatmul.f32.gmra.mxu1 %v1716_v56 }
 0x177   :  { %v480_v5 = vpop.f32.mrf.mxu2 }
 0x179   :  { %v2191_v0 = vpop.f32.mrf.mxu0  ;;  %v641_v28 = vpop.f32.mrf.mxu3 }
 0x17a   :  { %v2195_v9 = vadd.f32 %v641_v28, %v456_v53 }
 0x17b   :  { %v2197_v21 = vpop.f32.mrf.mxu1 }
 0x17c   :  { %783 = vmatmul.f32.gmra.mxu2 %v1750_v6  ;;  %1043 = vmatmul.f32.gmra.mxu0 %v1579_v24 }
 0x17e   :  { %892 = vmatmul.f32.gmra.mxu3 %v1884_v22  ;;  %1128 = vmatmul.f32.gmra.mxu1 %v1634_v52 }
 0x17f   :  { %v488_v57 = vpop.f32.mrf.mxu2 }
 0x181   :  { %v645_v49 = vpop.f32.mrf.mxu3  ;;  %v2201_v39 = vpop.f32.mrf.mxu0 }
 0x182   :  { %v2205_v56 = vadd.f32 %v645_v49, %v464_v7 }
 0x183   :  { %v2207_v6 = vpop.f32.mrf.mxu1 }
 0x184   :  { %788 = vmatmul.f32.gmra.mxu2 %v1736_v60  ;;  %1047 = vmatmul.f32.gmra.mxu0 %v1548_v13  ;;  %v618_v25 = vadd.f32 %v2207_v6, %v2171_v8 }
 0x186   :  { %898 = vmatmul.f32.gmra.mxu3 %v1856_v14  ;;  %1132 = vmatmul.f32.gmra.mxu1 %v1592_v30 }
 0x187   :  { %v496_v17 = vpop.f32.mrf.mxu2 }
 0x189   :  { %v649_v18 = vpop.f32.mrf.mxu3  ;;  %v2217_v60 = vpop.f32.mrf.mxu0 }
 0x18a   :  { %v2213_v52 = vadd.f32 %v649_v18, %v472_v16 }
 0x18b   :  { %v2215_v22 = vpop.f32.mrf.mxu1 }
 0x18c   :  { %793 = vmatmul.f32.gmra.mxu2 %v1589_v11  ;;  %1051 = vmatmul.f32.gmra.mxu0 %v1498_v44 }
 0x18e   :  { %904 = vmatmul.f32.gmra.mxu3 %v1830_v59  ;;  %1136 = vmatmul.f32.gmra.mxu1 %v1618_v40  ;;  %v2300_v59 = vld [vmem:[#allocation6_spill] sm:$0xff] }
 0x18f   :  { %v504_v3 = vpop.f32.mrf.mxu2 }
 0x191   :  { %v653_v1 = vpop.f32.mrf.mxu3  ;;  %v992_v11 = vpop.f32.mrf.mxu0 }
 0x192   :  { %v2221_v14 = vadd.f32 %v653_v1, %v480_v5 }
 0x193   :  { %v2223_v30 = vpop.f32.mrf.mxu1 }
 0x196   :  { %910 = vmatmul.f32.gmra.mxu3 %v1810_v43  ;;  %1140 = vmatmul.f32.gmra.mxu1 %v1579_v24  ;;  %v2301_v43 = vld [vmem:[#allocation5_spill] sm:$0xff] }
 0x197   :  { %v719_v45 = vpop.f32.mrf.mxu2 }
 0x199   :  { %v657_v58 = vpop.f32.mrf.mxu3  ;;  %v996_v40 = vpop.f32.mrf.mxu0 }
 0x19a   :  { %v2227_v36 = vadd.f32 %v657_v58, %v488_v57 }
 0x19b   :  { %v2229_v23 = vpop.f32.mrf.mxu1 }
 0x19e   :  { %916 = vmatmul.f32.gmra.mxu3 %v2300_v59  ;;  %1144 = vmatmul.f32.gmra.mxu1 %v1548_v13  ;;  %v606_v13 = vadd.f32 %v2177_v4, %v2153_v47  ;;  %v614_v47 = vadd.f32 %v2197_v21, %v2165_v20  ;;  %v622_v21 = vadd.f32 %v2215_v22, %v2181_v61 }
 0x19f   :  { %v724_v27 = vpop.f32.mrf.mxu2  ;;  %v630_v22 = vadd.f32 %v2229_v23, %v2201_v39 }
 0x1a0   :  { %v720_v51 = vadd.f32 %v719_v45, %v606_v13  ;;  %v725_v34 = vadd.f32 %v724_v27, %v610_v33 }
 0x1a1   :  { %v661_v62 = vpop.f32.mrf.mxu3  ;;  %v1000_v2 = vpop.f32.mrf.mxu0 }
 0x1a2   :  { %v2233_v42 = vadd.f32 %v661_v62, %v496_v17 }
 0x1a3   :  { %v2235_v19 = vpop.f32.mrf.mxu1 }
 0x1a6   :  { %922 = vmatmul.f32.gmra.mxu3 %v2301_v43  ;;  %1148 = vmatmul.f32.gmra.mxu1 %v1498_v44 }
 0x1a7   :  { %v729_v37 = vpop.f32.mrf.mxu2 }
 0x1a8   :  { %v730_v4 = vadd.f32 %v729_v37, %v614_v47  ;;  %v626_v37 = vadd.f32 %v2223_v30, %v2191_v0  ;;  %v634_v30 = vadd.f32 %v2235_v19, %v2217_v60 }
 0x1a9   :  { %v665_v24 = vpop.f32.mrf.mxu3  ;;  %v1004_v26 = vpop.f32.mrf.mxu0 }
 0x1aa   :  { %v2239_v32 = vadd.f32 %v665_v24, %v504_v3 }
 0x1ab   :  { %v1089_v15 = vpop.f32.mrf.mxu1 }
 0x1af   :  { %v734_v38 = vpop.f32.mrf.mxu2 }
 0x1b0   :  { %v735_v17 = vadd.f32 %v734_v38, %v618_v25 }
 0x1b1   :  { %v833_v29 = vpop.f32.mrf.mxu3  ;;  %v1008_v53 = vpop.f32.mrf.mxu0 }
 0x1b2   :  { %v834_v50 = vadd.f32 %v833_v29, %v720_v51 }
 0x1b3   :  { %v1093_v41 = vpop.f32.mrf.mxu1 }
 0x1b4   :  { %v993_v48 = vadd.f32 %v992_v11, %v834_v50 }
 0x1b6   :  { %v1090_v35 = vadd.f32 %v1089_v15, %v993_v48 }
 0x1b7   :  { %v739_v44 = vpop.f32.mrf.mxu2 }
 0x1b8   :  { %1152 = vst [vmem:[#allocation2] sm:$0xff] %v1090_v35  ;;  %v740_v58 = vadd.f32 %v739_v44, %v622_v21 }
 0x1b9   :  { %v839_v46 = vpop.f32.mrf.mxu3  ;;  %v1012_v49 = vpop.f32.mrf.mxu0 }
 0x1ba   :  { %v840_v10 = vadd.f32 %v839_v46, %v725_v34 }
 0x1bb   :  { %v1097_v55 = vpop.f32.mrf.mxu1 }
 0x1bc   :  { %v997_v12 = vadd.f32 %v996_v40, %v840_v10 }
 0x1be   :  { %v1094_v7 = vadd.f32 %v1093_v41, %v997_v12 }
 0x1bf   :  { %v744_v54 = vpop.f32.mrf.mxu2 }
 0x1c0   :  { %1153 = vst [vmem:[#allocation2 + $0x8] sm:$0xff] %v1094_v7  ;;  %v745_v24 = vadd.f32 %v744_v54, %v626_v37 }
 0x1c1   :  { %v845_v16 = vpop.f32.mrf.mxu3  ;;  %v1016_v59 = vpop.f32.mrf.mxu0 }
 0x1c2   :  { %v846_v5 = vadd.f32 %v845_v16, %v730_v4 }
 0x1c3   :  { %v1101_v28 = vpop.f32.mrf.mxu1 }
 0x1c4   :  { %v1001_v31 = vadd.f32 %v1000_v2, %v846_v5 }
 0x1c6   :  { %v1098_v57 = vadd.f32 %v1097_v55, %v1001_v31 }
 0x1c7   :  { %v749_v45 = vpop.f32.mrf.mxu2 }
 0x1c8   :  { %1154 = vst [vmem:[#allocation2 + $0x10] sm:$0xff] %v1098_v57  ;;  %v750_v50 = vadd.f32 %v749_v45, %v630_v22 }
 0x1c9   :  { %v851_v18 = vpop.f32.mrf.mxu3  ;;  %v1020_v38 = vpop.f32.mrf.mxu0 }
 0x1ca   :  { %v852_v3 = vadd.f32 %v851_v18, %v735_v17 }
 0x1cb   :  { %v1105_v1 = vpop.f32.mrf.mxu1 }
 0x1cc   :  { %v1005_v20 = vadd.f32 %v1004_v26, %v852_v3 }
 0x1ce   :  { %v1102_v11 = vadd.f32 %v1101_v28, %v1005_v20 }
 0x1cf   :  { %v754_v6 = vpop.f32.mrf.mxu2 }
 0x1d0   :  { %1155 = vst [vmem:[#allocation2 + $0x18] sm:$0xff] %v1102_v11  ;;  %v755_v44 = vadd.f32 %v754_v6, %v634_v30 }
 0x1d1   :  { %v857_v27 = vpop.f32.mrf.mxu3  ;;  %v1024_v0 = vpop.f32.mrf.mxu0 }
 0x1d2   :  { %v858_v40 = vadd.f32 %v857_v27, %v740_v58 }
 0x1d3   :  { %v1109_v62 = vpop.f32.mrf.mxu1 }
 0x1d4   :  { %v1009_v8 = vadd.f32 %v1008_v53, %v858_v40 }
 0x1d6   :  { %v1106_v43 = vadd.f32 %v1105_v1, %v1009_v8 }
 0x1d7   :  { %v759_v29 = vpop.f32.mrf.mxu2 }
 0x1d8   :  { %1156 = vst [vmem:[#allocation2 + $0x20] sm:$0xff] %v1106_v43  ;;  %v760_v53 = vadd.f32 %v759_v29, %v2185_v63 }
 0x1d9   :  { %v863_v2 = vpop.f32.mrf.mxu3  ;;  %v1028_v12 = vpop.f32.mrf.mxu0 }
 0x1da   :  { %v864_v15 = vadd.f32 %v863_v2, %v745_v24 }
 0x1db   :  { %v1113_v13 = vpop.f32.mrf.mxu1 }
 0x1dc   :  { %v1013_v61 = vadd.f32 %v1012_v49, %v864_v15 }
 0x1de   :  { %v1110_v51 = vadd.f32 %v1109_v62, %v1013_v61 }
 0x1df   :  { %v764_v46 = vpop.f32.mrf.mxu2 }
 0x1e0   :  { %1157 = vst [vmem:[#allocation2 + $0x28] sm:$0xff] %v1110_v51  ;;  %v765_v60 = vadd.f32 %v764_v46, %v2195_v9 }
 0x1e1   :  { %v869_v41 = vpop.f32.mrf.mxu3  ;;  %v1032_v19 = vpop.f32.mrf.mxu0 }
 0x1e2   :  { %v870_v26 = vadd.f32 %v869_v41, %v750_v50 }
 0x1e3   :  { %v1117_v48 = vpop.f32.mrf.mxu1 }
 0x1e4   :  { %v1017_v33 = vadd.f32 %v1016_v59, %v870_v26 }
 0x1e6   :  { %v1114_v35 = vadd.f32 %v1113_v13, %v1017_v33 }
 0x1e7   :  { %v769_v16 = vpop.f32.mrf.mxu2 }
 0x1e8   :  { %1158 = vst [vmem:[#allocation2 + $0x30] sm:$0xff] %v1114_v35  ;;  %v770_v18 = vadd.f32 %v769_v16, %v2205_v56 }
 0x1e9   :  { %v875_v34 = vpop.f32.mrf.mxu3  ;;  %v1036_v1 = vpop.f32.mrf.mxu0 }
 0x1ea   :  { %v876_v10 = vadd.f32 %v875_v34, %v755_v44 }
 0x1eb   :  { %v1121_v55 = vpop.f32.mrf.mxu1 }
 0x1ec   :  { %v1021_v39 = vadd.f32 %v1020_v38, %v876_v10 }
 0x1ee   :  { %v1118_v23 = vadd.f32 %v1117_v48, %v1021_v39 }
 0x1ef   :  { %v774_v49 = vpop.f32.mrf.mxu2 }
 0x1f0   :  { %1159 = vst [vmem:[#allocation2 + $0x38] sm:$0xff] %v1118_v23  ;;  %v775_v9 = vadd.f32 %v774_v49, %v2213_v52 }
 0x1f1   :  { %v881_v47 = vpop.f32.mrf.mxu3  ;;  %v1040_v40 = vpop.f32.mrf.mxu0 }
 0x1f2   :  { %v882_v7 = vadd.f32 %v881_v47, %v760_v53 }
 0x1f3   :  { %v1125_v4 = vpop.f32.mrf.mxu1 }
 0x1f4   :  { %v1025_v54 = vadd.f32 %v1024_v0, %v882_v7 }
 0x1f6   :  { %v1122_v5 = vadd.f32 %v1121_v55, %v1025_v54 }
 0x1f7   :  { %v779_v11 = vpop.f32.mrf.mxu2 }
 0x1f8   :  { %1160 = vst [vmem:[#allocation2 + $0x40] sm:$0xff] %v1122_v5  ;;  %v780_v6 = vadd.f32 %v779_v11, %v2221_v14 }
 0x1f9   :  { %v887_v28 = vpop.f32.mrf.mxu3  ;;  %v1044_v15 = vpop.f32.mrf.mxu0 }
 0x1fa   :  { %v888_v31 = vadd.f32 %v887_v28, %v765_v60 }
 0x1fb   :  { %v1129_v25 = vpop.f32.mrf.mxu1 }
 0x1fc   :  { %v1029_v57 = vadd.f32 %v1028_v12, %v888_v31 }
 0x1fe   :  { %v1126_v17 = vadd.f32 %v1125_v4, %v1029_v57 }
 0x1ff   :  { %v784_v56 = vpop.f32.mrf.mxu2 }
 0x200   :  { %1161 = vst [vmem:[#allocation2 + $0x48] sm:$0xff] %v1126_v17  ;;  %v785_v38 = vadd.f32 %v784_v56, %v2227_v36 }
 0x201   :  { %v893_v63 = vpop.f32.mrf.mxu3  ;;  %v1048_v14 = vpop.f32.mrf.mxu0 }
 0x202   :  { %v894_v3 = vadd.f32 %v893_v63, %v770_v18 }
 0x203   :  { %v1133_v20 = vpop.f32.mrf.mxu1 }
 0x204   :  { %v1033_v45 = vadd.f32 %v1032_v19, %v894_v3 }
 0x206   :  { %v1130_v21 = vadd.f32 %v1129_v25, %v1033_v45 }
 0x207   :  { %v789_v22 = vpop.f32.mrf.mxu2 }
 0x208   :  { %1162 = vst [vmem:[#allocation2 + $0x50] sm:$0xff] %v1130_v21  ;;  %v790_v50 = vadd.f32 %v789_v22, %v2233_v42 }
 0x209   :  { %v899_v58 = vpop.f32.mrf.mxu3  ;;  %v1052_v42 = vpop.f32.mrf.mxu0 }
 0x20a   :  { %v900_v27 = vadd.f32 %v899_v58, %v775_v9 }
 0x20b   :  { %v1137_v8 = vpop.f32.mrf.mxu1 }
 0x20c   :  { %v1037_v59 = vadd.f32 %v1036_v1, %v900_v27 }
 0x20e   :  { %v1134_v62 = vadd.f32 %v1133_v20, %v1037_v59 }
 0x20f   :  { %v794_v0 = vpop.f32.mrf.mxu2 }
 0x210   :  { %1163 = vst [vmem:[#allocation2 + $0x58] sm:$0xff] %v1134_v62  ;;  %v795_v35 = vadd.f32 %v794_v0, %v2239_v32 }
 0x211   :  { %v905_v37 = vpop.f32.mrf.mxu3 }
 0x212   :  { %v906_v43 = vadd.f32 %v905_v37, %v780_v6 }
 0x213   :  { %v1141_v52 = vpop.f32.mrf.mxu1 }
 0x214   :  { %v1041_v24 = vadd.f32 %v1040_v40, %v906_v43 }
 0x216   :  { %v1138_v2 = vadd.f32 %v1137_v8, %v1041_v24 }
 0x218   :  { %1164 = vst [vmem:[#allocation2 + $0x60] sm:$0xff] %v1138_v2 }
 0x219   :  { %v911_v13 = vpop.f32.mrf.mxu3 }
 0x21a   :  { %v912_v61 = vadd.f32 %v911_v13, %v785_v38 }
 0x21b   :  { %v1145_v48 = vpop.f32.mrf.mxu1 }
 0x21c   :  { %v1045_v51 = vadd.f32 %v1044_v15, %v912_v61 }
 0x21e   :  { %v1142_v29 = vadd.f32 %v1141_v52, %v1045_v51 }
 0x220   :  { %1165 = vst [vmem:[#allocation2 + $0x68] sm:$0xff] %v1142_v29 }
 0x221   :  { %v917_v41 = vpop.f32.mrf.mxu3 }
 0x222   :  { %v918_v26 = vadd.f32 %v917_v41, %v790_v50 }
 0x223   :  { %v1149_v46 = vpop.f32.mrf.mxu1 }
 0x224   :  { %v1049_v33 = vadd.f32 %v1048_v14, %v918_v26 }
 0x226   :  { %v1146_v30 = vadd.f32 %v1145_v48, %v1049_v33 }
 0x228   :  { %1166 = vst [vmem:[#allocation2 + $0x70] sm:$0xff] %v1146_v30 }
 0x229   :  { %v923_v36 = vpop.f32.mrf.mxu3 }
 0x22a   :  { %v924_v44 = vadd.f32 %v923_v36, %v795_v35 }
 0x22c   :  { %v1053_v34 = vadd.f32 %v1052_v42, %v924_v44 }
 0x22e   :  { %v1150_v10 = vadd.f32 %v1149_v46, %v1053_v34 }
 0x230   :  { %1167 = vst [vmem:[#allocation2 + $0x78] sm:$0xff] %v1150_v10 }
 0x231   :  { %1180 = dma.vmem_to_hbm [thread:$0]  %s1173_s9, 2048, %s1175_s12, [#allocation3], %s1280_s13, %s1280_s13, %s1281_s14  }
 0x232   :  { %1277 = dma.done.wait [#allocation3], 2048  }
 0x233   :  { %1278 = vsyncadd [#allocation3], 4294965248 }
 0x234   :  { %1185 = vsyncpa [#allocation3], 1 }

</bundles_post_ra>
